<compile_context>
chip_gen: v7x
topology: tpu7x:2x2x1
jax: 0.10.0
libtpu: 0.0.40
codegen_flags: <defaults>
</compile_context>

<pallas_src>
from functools import partial

import jax
import jax.numpy as jnp
from jax.experimental import pallas as pl
from jax.experimental.pallas import tpu as pltpu


def _round_up(v, m):
    return (v + m - 1) // m * m


_RESIDENT_XW_BUDGET = 36 << 20   # conservative: v7x has 64 MiB VMEM per TensorCore
_VMEM_LIMIT_CAP = 48 << 20


def _ecge_matmul_kernel(a_ref, xw_ref, b_ref, o_ref, acc_ref, *,
                        tk, xw_resident, precision):
    """One (row-tile i, k-tile k) step of out = A_cat @ XW_cat.

    f32 VMEM accumulator; bias + leaky_relu(0.01) applied on the last k step.
    """
    k = pl.program_id(1)

    if xw_resident:
        # Whole XW_cat lives in VMEM (constant block index -> fetched once);
        # slice out the k-th contraction chunk.
        off = pl.multiple_of(k * tk, tk)
        xw = xw_ref[pl.ds(off, tk), :]
    else:
        xw = xw_ref[...]

    prod = jnp.dot(a_ref[...], xw,
                   preferred_element_type=jnp.float32, precision=precision)

    @pl.when(k == 0)
    def _():
        acc_ref[...] = prod                       # init: no zero-fill + add

    @pl.when(k > 0)
    def _():
        acc_ref[...] += prod

    @pl.when(k == pl.num_programs(1) - 1)
    def _():
        y = acc_ref[...] + b_ref[...].astype(jnp.float32)   # bias broadcast [1, C]
        y = jnp.where(y > 0, y, 0.01 * y)                    # leaky_relu(0.01)
        # TODO(synk): F.dropout(p=0.2) is identity in eval mode; not applied here.
        o_ref[...] = y.astype(o_ref.dtype)


@partial(jax.jit, static_argnames=("compute_dtype", "tm", "tk", "xw_resident"))
def ecge_conv(x, edge_index, edge_type, edge_weight, weights, bias, *,
              compute_dtype=jnp.bfloat16, tm=512, tk=1024, xw_resident=None):
    """x: [N, C_in] f32, edge_index: [2, E] i32, edge_type: [E] i32,
    edge_weight: [E] f32, weights: [T, C_in, C_out] f32, bias: [C_out] f32.

    compute_dtype: MXU-input dtype for A_cat / XW_cat (accumulation is f32).
    xw_resident:   None = auto (keep XW_cat fully VMEM-resident when it fits).
    """
    n, _ = x.shape
    n_types, _, c_out = weights.shape
    row, col = edge_index[0], edge_index[1]

    # ---- plain-JAX glue: degree normalization (edge-list) -------------------
    deg = jnp.zeros((n,), jnp.float32).at[col].add(1.0)
    dinv = jnp.where(deg > 0, jax.lax.rsqrt(deg), 0.0)
    norm = dinv[row] * dinv[col] * edge_weight.astype(jnp.float32)

    # ---- padded geometry -----------------------------------------------------
    n128 = _round_up(n, 128)
    tm = min(_round_up(tm, 128), n128)
    n_pad = _round_up(n128, tm)
    c_out_pad = _round_up(c_out, 128)            # lane-dense stores / MXU width
    k_total = n_types * n_pad
    tk = min(_round_up(tk, 128), k_total)
    while k_total % tk:                          # k_total is a multiple of 128
        tk -= 128

    # ---- VMEM sizing: keep XW_cat fully resident when it fits ---------------
    cd_bytes = jnp.dtype(compute_dtype).itemsize
    out_bytes = jnp.dtype(x.dtype).itemsize
    fixed = (2 * tm * tk * cd_bytes              # A tiles, double-buffered
             + 2 * tm * c_out_pad * out_bytes    # output tiles
             + tm * c_out_pad * 4                # f32 accumulator
             + 2 * c_out_pad * 4)                # bias
    xw_full_bytes = k_total * c_out_pad * cd_bytes
    xw_tile_bytes = tk * c_out_pad * cd_bytes
    if xw_resident is None:
        xw_resident = fixed + 2 * xw_full_bytes <= _RESIDENT_XW_BUDGET
    working_set = fixed + 2 * (xw_full_bytes if xw_resident else xw_tile_bytes)
    vmem_limit = int(min(max(working_set + working_set // 4 + (2 << 20), 32 << 20),
                         _VMEM_LIMIT_CAP))

    # ---- A_cat: dense concatenated (normalized, typed) adjacency ------------
    # Scatter-add stays f32 so duplicate (row, type, col) edges accumulate
    # exactly; the cast to compute_dtype fuses under jit (no extra f32 copy).
    # TODO(synk): scalar-prefetch block-sparse path for very sparse graphs
    #             (E << N^2) where the dense O(4*N^2) build/read dominates.
    a_cat = jnp.zeros((n_pad, k_total), jnp.float32)
    a_cat = a_cat.at[row, edge_type * n_pad + col].add(norm)
    a_cat = a_cat.astype(compute_dtype)

    # ---- hoisted per-type input transform XW_cat -----------------------------
    xw = jnp.einsum("nc,tco->tno",
                    x.astype(jnp.float32), weights.astype(jnp.float32),
                    precision=jax.lax.Precision.HIGHEST)
    xw = jnp.pad(xw, ((0, 0), (0, n_pad - n), (0, c_out_pad - c_out)))
    xw = xw.reshape(k_total, c_out_pad).astype(compute_dtype)

    bias2d = jnp.pad(bias.astype(jnp.float32),
                     (0, c_out_pad - c_out)).reshape(1, c_out_pad)

    grid = (n_pad // tm, k_total // tk)   # (row tiles [parallel], K [reduction])

    if xw_resident:
        xw_spec = pl.BlockSpec((k_total, c_out_pad), lambda i, k: (0, 0))
    else:
        xw_spec = pl.BlockSpec((tk, c_out_pad), lambda i, k: (k, 0))

    precision = (jax.lax.Precision.HIGHEST
                 if jnp.dtype(compute_dtype) == jnp.dtype(jnp.float32) else None)
    kernel = partial(_ecge_matmul_kernel, tk=tk, xw_resident=xw_resident,
                     precision=precision)

    out = pl.pallas_call(
        kernel,
        out_shape=jax.ShapeDtypeStruct((n_pad, c_out_pad), x.dtype),
        grid_spec=pltpu.PrefetchScalarGridSpec(
            num_scalar_prefetch=0,
            grid=grid,
            in_specs=[
                pl.BlockSpec((tm, tk), lambda i, k: (i, k)),        # A tile
                xw_spec,                                            # XW (resident/stream)
                pl.BlockSpec((1, c_out_pad), lambda i, k: (0, 0)),  # bias (copied once)
            ],
            out_specs=pl.BlockSpec((tm, c_out_pad), lambda i, k: (i, 0)),
            scratch_shapes=[pltpu.VMEM((tm, c_out_pad), jnp.float32)],
        ),
        compiler_params=pltpu.CompilerParams(
            dimension_semantics=("parallel", "arbitrary"),
            vmem_limit_bytes=vmem_limit,
        ),
    )(a_cat, xw, bias2d)

    return out[:n, :c_out]


def ecge_conv_ref(x, edge_index, edge_type, edge_weight, weights, bias):
    """Pure-JAX reference mirroring the PyTorch edge-list formulation."""
    n = x.shape[0]
    row, col = edge_index[0], edge_index[1]
    deg = jnp.zeros((n,), x.dtype).at[col].add(jnp.ones_like(col, dtype=x.dtype))
    dinv = jnp.where(deg > 0, deg ** -0.5, 0.0)
    norm = dinv[row] * dinv[col] * edge_weight
    w_e = weights[edge_type]                               # [E, C_in, C_out]
    x_j = jnp.einsum("ei,eio->eo", x[col], w_e,
                     precision=jax.lax.Precision.HIGHEST)  # per-edge matmul
    x_j = norm[:, None] * x_j
    out = jnp.zeros((n, weights.shape[-1]), x.dtype).at[row].add(x_j)
    out = out + bias
    return jnp.where(out > 0, out, 0.01 * out)


if __name__ == "__main__":
    key = jax.random.PRNGKey(0)
    N, C_IN, C_OUT, E, N_TYPES = 16, 8, 16, 40, 4

    k_x, k_ei, k_et, k_ew, k_w = jax.random.split(key, 5)
    x = jax.random.normal(k_x, (N, C_IN), dtype=jnp.float32)
    edge_index = jax.random.randint(k_ei, (2, E), 0, N, dtype=jnp.int32)
    edge_type = jax.random.randint(k_et, (E,), 0, N_TYPES, dtype=jnp.int32)
    edge_weight = jax.random.uniform(k_ew, (E,), dtype=jnp.float32)

    # Parameters: xavier_uniform_ for weights, zeros for bias (deterministic).
    bound = (6.0 / (C_IN + C_OUT)) ** 0.5
    weights = jax.random.uniform(
        k_w, (N_TYPES, C_IN, C_OUT), minval=-bound, maxval=bound, dtype=jnp.float32)
    bias = jnp.zeros((C_OUT,), dtype=jnp.float32)

    ref = jax.block_until_ready(
        ecge_conv_ref(x, edge_index, edge_type, edge_weight, weights, bias))

    # 1) Default path: bf16 MXU inputs, f32 accumulation, XW auto-resident.
    out = jax.block_until_ready(
        ecge_conv(x, edge_index, edge_type, edge_weight, weights, bias))
    assert out.shape == (N, C_OUT)
    assert jnp.allclose(out, ref, rtol=2e-2, atol=2e-2), "bf16 default path mismatch"

    # 2) f32 MXU-input path: near-exact vs reference.
    out_f32 = jax.block_until_ready(
        ecge_conv(x, edge_index, edge_type, edge_weight, weights, bias,
                  compute_dtype=jnp.float32))
    assert jnp.allclose(out_f32, ref, rtol=1e-4, atol=1e-4), "f32 path mismatch"

    # 3) Streamed-XW path with a real K-reduction loop (accumulate branches).
    out_stream = jax.block_until_ready(
        ecge_conv(x, edge_index, edge_type, edge_weight, weights, bias,
                  tk=128, xw_resident=False))
    assert jnp.allclose(out_stream, ref, rtol=2e-2, atol=2e-2), "streamed-XW path mismatch"

    # 4) Resident-XW path with k>0 dynamic VMEM slices.
    out_res = jax.block_until_ready(
        ecge_conv(x, edge_index, edge_type, edge_weight, weights, bias,
                  tk=128, xw_resident=True))
    assert jnp.allclose(out_res, ref, rtol=2e-2, atol=2e-2), "resident-XW path mismatch"

    print("KERNEL_OK")
</pallas_src>

<mosaic_0001>
module attributes {stable_mosaic.version = 11 : i64} {
  func.func @_ecge_matmul_kernel(%arg0: i32, %arg1: i32, %arg2: memref<128x512xbf16, #tpu.memory_space<vmem>>, %arg3: memref<512x128xbf16, #tpu.memory_space<vmem>>, %arg4: memref<1x128xf32, #tpu.memory_space<vmem>>, %arg5: memref<128x128xf32, #tpu.memory_space<vmem>>, %arg6: memref<128x128xf32, #tpu.memory_space<vmem>>) attributes {dimension_semantics = [#tpu.dimension_semantics<parallel>, #tpu.dimension_semantics<arbitrary>], iteration_bounds = array<i64: 1, 1>, scalar_prefetch = 0 : i64, scratch_operands = 1 : i64, tpu.core_type = #tpu.core_type<tc>, window_params = [{transform_indices = @transform_0, window_bounds = array<i64: 128, 512>}, {pipeline_mode = #tpu.pipeline_mode<synchronous>, transform_indices = @transform_1, window_bounds = array<i64: 512, 128>}, {pipeline_mode = #tpu.pipeline_mode<synchronous>, transform_indices = @transform_2, window_bounds = array<i64: 1, 128>}, {transform_indices = @transform_3, window_bounds = array<i64: 128, 128>}]} {
    %c512_i32 = arith.constant 512 : i32
    %0 = arith.muli %arg1, %c512_i32 : i32
    %1 = tpu.assume_multiple %0, 512 : i32
    %2 = arith.index_cast %1 : i32 to index
    %c0 = arith.constant 0 : index
    %3 = vector.load %arg3[%2, %c0] : memref<512x128xbf16, #tpu.memory_space<vmem>>, vector<512x128xbf16>
    %c0_0 = arith.constant 0 : index
    %c0_1 = arith.constant 0 : index
    %4 = vector.load %arg2[%c0_0, %c0_1] : memref<128x512xbf16, #tpu.memory_space<vmem>>, vector<128x512xbf16>
    %cst = arith.constant dense<0.000000e+00> : vector<128x128xf32>
    %5 = tpu.matmul %4, %3, %cst {dimension_numbers = #tpu.dot_dimension_numbers<[1], [0], [0], [1], [0, 0, 1, 1], [], []>} : vector<128x512xbf16>, vector<512x128xbf16>, vector<128x128xf32> -> vector<128x128xf32>
    %c0_i32 = arith.constant 0 : i32
    %6 = arith.cmpi eq, %arg1, %c0_i32 : i32
    %7 = arith.extui %6 : i1 to i32
    %c0_i32_2 = arith.constant 0 : i32
    %8 = arith.cmpi ne, %7, %c0_i32_2 : i32
    scf.if %8 {
      %c0_7 = arith.constant 0 : index
      %c0_8 = arith.constant 0 : index
      %15 = vector.load %arg6[%c0_7, %c0_8] : memref<128x128xf32, #tpu.memory_space<vmem>>, vector<128x128xf32>
      tpu.vector_store %arg6[%c0_7, %c0_8], %5 {strides = array<i32>} : memref<128x128xf32, #tpu.memory_space<vmem>>, vector<128x128xf32>,
    } else {
    }
    %c0_i32_3 = arith.constant 0 : i32
    %9 = arith.cmpi sgt, %arg1, %c0_i32_3 : i32
    %10 = arith.extui %9 : i1 to i32
    %c0_i32_4 = arith.constant 0 : i32
    %11 = arith.cmpi ne, %10, %c0_i32_4 : i32
    scf.if %11 {
      %c0_7 = arith.constant 0 : index
      %c0_8 = arith.constant 0 : index
      %15 = vector.load %arg6[%c0_7, %c0_8] : memref<128x128xf32, #tpu.memory_space<vmem>>, vector<128x128xf32>
      %16 = arith.addf %15, %5 : vector<128x128xf32>
      %c0_9 = arith.constant 0 : index
      %c0_10 = arith.constant 0 : index
      %17 = vector.load %arg6[%c0_9, %c0_10] : memref<128x128xf32, #tpu.memory_space<vmem>>, vector<128x128xf32>
      tpu.vector_store %arg6[%c0_9, %c0_10], %16 {strides = array<i32>} : memref<128x128xf32, #tpu.memory_space<vmem>>, vector<128x128xf32>,
    } else {
    }
    %c0_i32_5 = arith.constant 0 : i32
    %12 = arith.cmpi eq, %arg1, %c0_i32_5 : i32
    %13 = arith.extui %12 : i1 to i32
    %c0_i32_6 = arith.constant 0 : i32
    %14 = arith.cmpi ne, %13, %c0_i32_6 : i32
    scf.if %14 {
      %c0_7 = arith.constant 0 : index
      %c0_8 = arith.constant 0 : index
      %15 = vector.load %arg6[%c0_7, %c0_8] : memref<128x128xf32, #tpu.memory_space<vmem>>, vector<128x128xf32>
      %c0_9 = arith.constant 0 : index
      %c0_10 = arith.constant 0 : index
      %16 = vector.load %arg4[%c0_9, %c0_10] : memref<1x128xf32, #tpu.memory_space<vmem>>, vector<1x128xf32>
      %17 = vector.broadcast %16 : vector<1x128xf32> to vector<128x128xf32>
      %18 = arith.addf %15, %17 : vector<128x128xf32>
      %cst_11 = arith.constant 0.000000e+00 : f32
      %19 = vector.broadcast %cst_11 : f32 to vector<128x128xf32>
      %20 = arith.cmpf ogt, %18, %19 : vector<128x128xf32>
      %cst_12 = arith.constant 0.00999999977 : f32
      %21 = vector.broadcast %cst_12 : f32 to vector<128x128xf32>
      %22 = arith.mulf %21, %18 : vector<128x128xf32>
      %23 = arith.select %20, %18, %22 : vector<128x128xi1>, vector<128x128xf32>
      %c0_13 = arith.constant 0 : index
      %c0_14 = arith.constant 0 : index
      %24 = vector.load %arg5[%c0_13, %c0_14] : memref<128x128xf32, #tpu.memory_space<vmem>>, vector<128x128xf32>
      tpu.vector_store %arg5[%c0_13, %c0_14], %23 {strides = array<i32>} : memref<128x128xf32, #tpu.memory_space<vmem>>, vector<128x128xf32>,
    } else {
    }
    return
  }
  func.func @transform_0(%arg0: i32, %arg1: i32) -> (i32, i32) {
    %c0_i32 = arith.constant 0 : i32
    return %arg0, %arg1 : i32, i32
  }
  func.func @transform_1(%arg0: i32, %arg1: i32) -> (i32, i32) {
    %c0_i32 = arith.constant 0 : i32
    %c0_i32_0 = arith.constant 0 : i32
    %c0_i32_1 = arith.constant 0 : i32
    return %c0_i32, %c0_i32_0 : i32, i32
  }
  func.func @transform_2(%arg0: i32, %arg1: i32) -> (i32, i32) {
    %c0_i32 = arith.constant 0 : i32
    %c0_i32_0 = arith.constant 0 : i32
    %c0_i32_1 = arith.constant 0 : i32
    return %c0_i32, %c0_i32_0 : i32, i32
  }
  func.func @transform_3(%arg0: i32, %arg1: i32) -> (i32, i32) {
    %c0_i32 = arith.constant 0 : i32
    %c0_i32_0 = arith.constant 0 : i32
    return %arg0, %c0_i32 : i32, i32
  }
}

</mosaic_0001>

<bundles_post_ra>
// kernel: ecge_conv.1
= control target key start
LH: loop header
LB: loop body
LE: loop exit
PB: predicated region body
PF: predicated region fallthrough
CT: control target
= control target key end

     0   :  { %s1400_s1 = inlined_call_operand.vmem [shape: bf16[512,128], index: 1, kind: input, shape index: {}]   ;;  %s1401_s0 = inlined_call_operand.vmem [shape: bf16[128,512], index: 0, kind: input, shape index: {}]   ;;  %s1402_s2 = inlined_call_operand.vmem [shape: f32[1,128], index: 2, kind: input, shape index: {}]   ;;  %s1403_s3 = inlined_call_operand.vmem [shape: f32[128,128], index: 3, kind: output, shape index: {}]  }
   0x1   :  { %v1039_v0 = vld [vmem:[%s1400_s1 + $0x40] sm:$0xff]   ;;  %v1043_v4 = vld [vmem:[%s1400_s1 + $0x48] sm:$0xff]   ;;  %v1047_v8 = vld [vmem:[%s1400_s1 + $0x50] sm:$0xff]  }
   0x2   :  { %v1040_v1 = vld [vmem:[%s1400_s1 + $0xc0] sm:$0xff]   ;;  %911 = vmatprep.subr.bf16.mxu0 %v1039_v0  ;;  %v1044_v5 = vld [vmem:[%s1400_s1 + $0xc8] sm:$0xff]   ;;  %v1048_v9 = vld [vmem:[%s1400_s1 + $0xd0] sm:$0xff]  }
   0x3   :  { %v1041_v2 = vld [vmem:[%s1400_s1] sm:$0xff]   ;;  %975 = vmatprep.subr.bf16.mxu1 %v1040_v1  ;;  %v1045_v6 = vld [vmem:[%s1400_s1 + $0x8] sm:$0xff]   ;;  %v1049_v10 = vld [vmem:[%s1400_s1 + $0x10] sm:$0xff]  }
   0x4   :  { %v1042_v3 = vld [vmem:[%s1400_s1 + $0x80] sm:$0xff]   ;;  %912 = vmatpush3.bf16.msra.mxu0 %v1041_v2  ;;  %v1046_v7 = vld [vmem:[%s1400_s1 + $0x88] sm:$0xff]   ;;  %v1050_v11 = vld [vmem:[%s1400_s1 + $0x90] sm:$0xff]  }
   0x5   :  { %976 = vmatpush3.bf16.msra.mxu1 %v1042_v3  ;;  %913 = vmatprep.subr.bf16.mxu0 %v1043_v4  ;;  %v1051_v12 = vld [vmem:[%s1400_s1 + $0x58] sm:$0xff]   ;;  %v1055_v16 = vld [vmem:[%s1400_s1 + $0x60] sm:$0xff]   ;;  %v1059_v20 = vld [vmem:[%s1400_s1 + $0x68] sm:$0xff]  }
   0x6   :  { %977 = vmatprep.subr.bf16.mxu1 %v1044_v5  ;;  %v1052_v13 = vld [vmem:[%s1400_s1 + $0xd8] sm:$0xff]   ;;  %v1056_v17 = vld [vmem:[%s1400_s1 + $0xe0] sm:$0xff]   ;;  %v1060_v21 = vld [vmem:[%s1400_s1 + $0xe8] sm:$0xff]  }
   0x7   :  { %v1053_v14 = vld [vmem:[%s1400_s1 + $0x18] sm:$0xff]   ;;  %v1057_v18 = vld [vmem:[%s1400_s1 + $0x20] sm:$0xff]   ;;  %v1061_v22 = vld [vmem:[%s1400_s1 + $0x28] sm:$0xff]  }
   0x8   :  { %914 = vmatpush3.bf16.msra.mxu0 %v1045_v6  ;;  %v1054_v15 = vld [vmem:[%s1400_s1 + $0x98] sm:$0xff]   ;;  %v1058_v19 = vld [vmem:[%s1400_s1 + $0xa0] sm:$0xff]   ;;  %v1062_v23 = vld [vmem:[%s1400_s1 + $0xa8] sm:$0xff]  }
   0x9   :  { %978 = vmatpush3.bf16.msra.mxu1 %v1046_v7  ;;  %915 = vmatprep.subr.bf16.mxu0 %v1047_v8  ;;  %v1063_v24 = vld [vmem:[%s1400_s1 + $0x70] sm:$0xff]   ;;  %v1067_v28 = vld [vmem:[%s1400_s1 + $0x78] sm:$0xff]  }
   0xa   :  { %979 = vmatprep.subr.bf16.mxu1 %v1048_v9  ;;  %v1064_v25 = vld [vmem:[%s1400_s1 + $0xf0] sm:$0xff]   ;;  %v1068_v29 = vld [vmem:[%s1400_s1 + $0xf8] sm:$0xff]   ;;  %v1334_v9 = vld [vmem:[%s1402_s2] ss:$0 sm:$0xff] }
   0xb   :  { %v1065_v26 = vld [vmem:[%s1400_s1 + $0x30] sm:$0xff]   ;;  %v1069_v30 = vld [vmem:[%s1400_s1 + $0x38] sm:$0xff]  }
   0xc   :  { %916 = vmatpush3.bf16.msra.mxu0 %v1049_v10  ;;  %v1066_v27 = vld [vmem:[%s1400_s1 + $0xb0] sm:$0xff]   ;;  %v1070_v31 = vld [vmem:[%s1400_s1 + $0xb8] sm:$0xff]  }
   0xd   :  { %980 = vmatpush3.bf16.msra.mxu1 %v1050_v11  ;;  %917 = vmatprep.subr.bf16.mxu0 %v1051_v12  ;;  %v1071_v32 = vld [vmem:[%s1401_s0] ss:$16 sps:$4 sm:$0xff]   ;;  %v1073_v33 = vld [vmem:[%s1401_s0 + $0x4] ss:$16 sps:$4 sm:$0xff]   ;;  %v1074_v34 = vld [vmem:[%s1401_s0 + $0x8] ss:$16 sps:$4 sm:$0xff]  }
   0xe   :  { %981 = vmatprep.subr.bf16.mxu1 %v1052_v13  ;;  %v1076_v35 = vld [vmem:[%s1401_s0 + $0xc] ss:$16 sps:$4 sm:$0xff]   ;;  %500 = vmatprep.mubr.bf16.mxu0 %v1073_v33  ;;  %v1077_v36 = vld [vmem:[%s1401_s0 + $0x24] ss:$16 sps:$4 sm:$0xff]   ;;  %v1081_v38 = vld [vmem:[%s1401_s0 + $0x20] ss:$16 sps:$4 sm:$0xff]  }
   0xf   :  { %597 = vmatprep.mubr.bf16.mxu1 %v1076_v35  ;;  %v1079_v37 = vld [vmem:[%s1401_s0 + $0x2c] ss:$16 sps:$4 sm:$0xff]   ;;  %v1082_v39 = vld [vmem:[%s1401_s0 + $0x28] ss:$16 sps:$4 sm:$0xff]   ;;  %v1083_v40 = vld [vmem:[%s1401_s0 + $0x44] ss:$16 sps:$4 sm:$0xff]  }
  0x10   :  { %918 = vmatpush3.bf16.msra.mxu0 %v1053_v14  ;;  %v1085_v41 = vld [vmem:[%s1401_s0 + $0x4c] ss:$16 sps:$4 sm:$0xff]   ;;  %v1087_v42 = vld [vmem:[%s1401_s0 + $0x40] ss:$16 sps:$4 sm:$0xff]   ;;  %v1088_v43 = vld [vmem:[%s1401_s0 + $0x48] ss:$16 sps:$4 sm:$0xff]  }
  0x11   :  { %982 = vmatpush3.bf16.msra.mxu1 %v1054_v15  ;;  %919 = vmatprep.subr.bf16.mxu0 %v1055_v16  ;;  %v1089_v44 = vld [vmem:[%s1401_s0 + $0x64] ss:$16 sps:$4 sm:$0xff]   ;;  %v1091_v45 = vld [vmem:[%s1401_s0 + $0x6c] ss:$16 sps:$4 sm:$0xff]   ;;  %v1093_v46 = vld [vmem:[%s1401_s0 + $0x60] ss:$16 sps:$4 sm:$0xff]  }
  0x12   :  { %983 = vmatprep.subr.bf16.mxu1 %v1056_v17  ;;  %v1094_v47 = vld [vmem:[%s1401_s0 + $0x68] ss:$16 sps:$4 sm:$0xff]   ;;  %v1095_v48 = vld [vmem:[%s1401_s0 + $0x84] ss:$16 sps:$4 sm:$0xff]   ;;  %v1097_v49 = vld [vmem:[%s1401_s0 + $0x8c] ss:$16 sps:$4 sm:$0xff]  }
  0x13   :  { %v1099_v50 = vld [vmem:[%s1401_s0 + $0x80] ss:$16 sps:$4 sm:$0xff]   ;;  %v1100_v51 = vld [vmem:[%s1401_s0 + $0x88] ss:$16 sps:$4 sm:$0xff]   ;;  %v1101_v52 = vld [vmem:[%s1401_s0 + $0xa4] ss:$16 sps:$4 sm:$0xff]  }
  0x14   :  { %920 = vmatpush3.bf16.msra.mxu0 %v1057_v18  ;;  %v1103_v53 = vld [vmem:[%s1401_s0 + $0xac] ss:$16 sps:$4 sm:$0xff]   ;;  %v1105_v54 = vld [vmem:[%s1401_s0 + $0xa0] ss:$16 sps:$4 sm:$0xff]   ;;  %v1106_v55 = vld [vmem:[%s1401_s0 + $0xa8] ss:$16 sps:$4 sm:$0xff]  }
  0x15   :  { %984 = vmatpush3.bf16.msra.mxu1 %v1058_v19  ;;  %921 = vmatprep.subr.bf16.mxu0 %v1059_v20  ;;  %v1107_v56 = vld [vmem:[%s1401_s0 + $0xc4] ss:$16 sps:$4 sm:$0xff]   ;;  %v1109_v57 = vld [vmem:[%s1401_s0 + $0xcc] ss:$16 sps:$4 sm:$0xff]   ;;  %v1111_v58 = vld [vmem:[%s1401_s0 + $0xc0] ss:$16 sps:$4 sm:$0xff]  }
  0x16   :  { %985 = vmatprep.subr.bf16.mxu1 %v1060_v21  ;;  %v1112_v59 = vld [vmem:[%s1401_s0 + $0xc8] ss:$16 sps:$4 sm:$0xff]   ;;  %v1113_v60 = vld [vmem:[%s1401_s0 + $0xe4] ss:$16 sps:$4 sm:$0xff]   ;;  %v1115_v61 = vld [vmem:[%s1401_s0 + $0xec] ss:$16 sps:$4 sm:$0xff]  }
  0x17   :  { %v1117_v62 = vld [vmem:[%s1401_s0 + $0xe0] ss:$16 sps:$4 sm:$0xff]   ;;  %v1118_v63 = vld [vmem:[%s1401_s0 + $0xe8] ss:$16 sps:$4 sm:$0xff]  }
  0x18   :  { %922 = vmatpush3.bf16.msra.mxu0 %v1061_v22 }
  0x19   :  { %986 = vmatpush3.bf16.msra.mxu1 %v1062_v23  ;;  %923 = vmatprep.subr.bf16.mxu0 %v1063_v24 }
  0x1a   :  { %987 = vmatprep.subr.bf16.mxu1 %v1064_v25 }
  0x1c   :  { %924 = vmatpush3.bf16.msra.mxu0 %v1065_v26 }
  0x1d   :  { %988 = vmatpush3.bf16.msra.mxu1 %v1066_v27  ;;  %925 = vmatprep.subr.bf16.mxu0 %v1067_v28 }
  0x1e   :  { %989 = vmatprep.subr.bf16.mxu1 %v1068_v29 }
  0x20   :  { %926 = vmatpush3.bf16.msra.mxu0 %v1069_v30 }
  0x21   :  { %990 = vmatpush3.bf16.msra.mxu1 %v1070_v31 }
  0x23   :  { %501 = vmatmul.mubr.bf16.vlgmr.msra.gmra.mrb[0].mxu0 %v1071_v32 }
  0x24   :  { %598 = vmatmul.mubr.bf16.vlgmr.msra.gmra.mrb[0].mxu1 %v1074_v34  ;;  %508 = vmatprep.mubr.bf16.mxu0 %v1077_v36 }
  0x25   :  { %605 = vmatprep.mubr.bf16.mxu1 %v1079_v37 }
  0x2b   :  { %509 = vmatmul.mubr.bf16.gmra.mrb[4].mxu0 %v1081_v38 }
  0x2c   :  { %606 = vmatmul.mubr.bf16.gmra.mrb[4].mxu1 %v1082_v39  ;;  %516 = vmatprep.mubr.bf16.mxu0 %v1083_v40 }
  0x2d   :  { %613 = vmatprep.mubr.bf16.mxu1 %v1085_v41 }
  0x33   :  { %517 = vmatmul.mubr.bf16.gmra.mrb[8].mxu0 %v1087_v42 }
  0x34   :  { %614 = vmatmul.mubr.bf16.gmra.mrb[8].mxu1 %v1088_v43  ;;  %524 = vmatprep.mubr.bf16.mxu0 %v1089_v44 }
  0x35   :  { %621 = vmatprep.mubr.bf16.mxu1 %v1091_v45 }
  0x3b   :  { %525 = vmatmul.mubr.bf16.gmra.mrb[12].mxu0 %v1093_v46 }
  0x3c   :  { %622 = vmatmul.mubr.bf16.gmra.mrb[12].mxu1 %v1094_v47  ;;  %532 = vmatprep.mubr.bf16.mxu0 %v1095_v48 }
  0x3d   :  { %629 = vmatprep.mubr.bf16.mxu1 %v1097_v49 }
  0x43   :  { %533 = vmatmul.mubr.bf16.gmra.mrb[16].mxu0 %v1099_v50 }
  0x44   :  { %630 = vmatmul.mubr.bf16.gmra.mrb[16].mxu1 %v1100_v51  ;;  %540 = vmatprep.mubr.bf16.mxu0 %v1101_v52 }
  0x45   :  { %637 = vmatprep.mubr.bf16.mxu1 %v1103_v53 }
  0x4b   :  { %541 = vmatmul.mubr.bf16.gmra.mrb[20].mxu0 %v1105_v54 }
  0x4c   :  { %638 = vmatmul.mubr.bf16.gmra.mrb[20].mxu1 %v1106_v55  ;;  %548 = vmatprep.mubr.bf16.mxu0 %v1107_v56 }
  0x4d   :  { %645 = vmatprep.mubr.bf16.mxu1 %v1109_v57 }
  0x53   :  { %549 = vmatmul.mubr.bf16.gmra.mrb[24].mxu0 %v1111_v58 }
  0x54   :  { %646 = vmatmul.mubr.bf16.gmra.mrb[24].mxu1 %v1112_v59  ;;  %556 = vmatprep.mubr.bf16.mxu0 %v1113_v60 }
  0x55   :  { %653 = vmatprep.mubr.bf16.mxu1 %v1115_v61 }
  0x5b   :  { %557 = vmatmul.mubr.bf16.gmra.mrb[28].mxu0 %v1117_v62 }
  0x5c   :  { %654 = vmatmul.mubr.bf16.gmra.mrb[28].mxu1 %v1118_v63 }
  0xf6   :  { %v927_v0 = vpop.f32.mrb[0].mxu0 }
  0xf7   :  { %v991_v1 = vpop.f32.mrb[0].mxu1  ;;  %v928_v2 = vpop.f32.mrb[1].mxu0 }
  0xf8   :  { %v929_v3 = vadd.f32 %v928_v2, %v927_v0  ;;  %v992_v4 = vpop.f32.mrb[1].mxu1  ;;  %v930_v5 = vpop.f32.mrb[2].mxu0 }
  0xf9   :  { %v993_v6 = vadd.f32 %v992_v4, %v991_v1  ;;  %v994_v7 = vpop.f32.mrb[2].mxu1  ;;  %v931_v8 = vpop.f32.mrb[3].mxu0 }
  0xfa   :  { %v932_v10 = vadd.f32 %v931_v8, %v930_v5  ;;  %v995_v11 = vpop.f32.mrb[3].mxu1 }
  0xfb   :  { %v600_v12 = vadd.f32 %v993_v6, %v929_v3  ;;  %v996_v13 = vadd.f32 %v995_v11, %v994_v7 }
  0xfd   :  { %v760_v14 = vadd.f32 %v1334_v9, %v600_v12  ;;  %v603_v15 = vadd.f32 %v996_v13, %v932_v10 }
  0xfe   :  { %v933_v16 = vpop.f32.mrb[4].mxu0 }
  0xff   :  { %vm776_vm0 = vcmp.gt.f32.partialorder %v760_v14, 0.0  ;;  %v792_v17 = vmul.f32 0.01, %v760_v14  ;;  %v761_v18 = vadd.f32 %v1334_v9, %v603_v15  ;;  %v997_v19 = vpop.f32.mrb[4].mxu1  ;;  %v934_v20 = vpop.f32.mrb[5].mxu0 }
 0x100   :  { %v935_v21 = vadd.f32 %v934_v20, %v933_v16  ;;  %v998_v22 = vpop.f32.mrb[5].mxu1  ;;  %v936_v23 = vpop.f32.mrb[6].mxu0 }
 0x101   :  { %v808_v24 = vsel %vm776_vm0, %v760_v14, %v792_v17  ;;  %vm777_vm1 = vcmp.gt.f32.partialorder %v761_v18, 0.0  ;;  %v793_v25 = vmul.f32 0.01, %v761_v18  ;;  %v999_v26 = vadd.f32 %v998_v22, %v997_v19  ;;  %v1000_v27 = vpop.f32.mrb[6].mxu1  ;;  %v937_v28 = vpop.f32.mrb[7].mxu0 }
 0x102   :  { %824 = vst [vmem:[%s1403_s3] sm:$0xff] %v808_v24  ;;  %v938_v29 = vadd.f32 %v937_v28, %v936_v23  ;;  %v1001_v30 = vpop.f32.mrb[7].mxu1 }
 0x103   :  { %v809_v31 = vsel %vm777_vm1, %v761_v18, %v793_v25  ;;  %v608_v32 = vadd.f32 %v999_v26, %v935_v21  ;;  %v1002_v33 = vadd.f32 %v1001_v30, %v1000_v27 }
 0x104   :  { %825 = vst [vmem:[%s1403_s3 + $0x8] sm:$0xff] %v809_v31 }
 0x105   :  { %v762_v34 = vadd.f32 %v1334_v9, %v608_v32  ;;  %v611_v35 = vadd.f32 %v1002_v33, %v938_v29 }
 0x106   :  { %v939_v36 = vpop.f32.mrb[8].mxu0 }
 0x107   :  { %vm778_vm2 = vcmp.gt.f32.partialorder %v762_v34, 0.0  ;;  %v794_v37 = vmul.f32 0.01, %v762_v34  ;;  %v763_v38 = vadd.f32 %v1334_v9, %v611_v35  ;;  %v1003_v39 = vpop.f32.mrb[8].mxu1  ;;  %v940_v40 = vpop.f32.mrb[9].mxu0 }
 0x108   :  { %v941_v41 = vadd.f32 %v940_v40, %v939_v36  ;;  %v1004_v42 = vpop.f32.mrb[9].mxu1  ;;  %v942_v43 = vpop.f32.mrb[10].mxu0 }
 0x109   :  { %v810_v44 = vsel %vm778_vm2, %v762_v34, %v794_v37  ;;  %vm779_vm3 = vcmp.gt.f32.partialorder %v763_v38, 0.0  ;;  %v795_v45 = vmul.f32 0.01, %v763_v38  ;;  %v1005_v46 = vadd.f32 %v1004_v42, %v1003_v39  ;;  %v1006_v47 = vpop.f32.mrb[10].mxu1  ;;  %v943_v48 = vpop.f32.mrb[11].mxu0 }
 0x10a   :  { %826 = vst [vmem:[%s1403_s3 + $0x10] sm:$0xff] %v810_v44  ;;  %v944_v49 = vadd.f32 %v943_v48, %v942_v43  ;;  %v1007_v50 = vpop.f32.mrb[11].mxu1 }
 0x10b   :  { %v811_v51 = vsel %vm779_vm3, %v763_v38, %v795_v45  ;;  %v616_v52 = vadd.f32 %v1005_v46, %v941_v41  ;;  %v1008_v53 = vadd.f32 %v1007_v50, %v1006_v47 }
 0x10c   :  { %827 = vst [vmem:[%s1403_s3 + $0x18] sm:$0xff] %v811_v51 }
 0x10d   :  { %v764_v54 = vadd.f32 %v1334_v9, %v616_v52  ;;  %v619_v55 = vadd.f32 %v1008_v53, %v944_v49 }
 0x10e   :  { %v945_v56 = vpop.f32.mrb[12].mxu0 }
 0x10f   :  { %vm780_vm4 = vcmp.gt.f32.partialorder %v764_v54, 0.0  ;;  %v796_v57 = vmul.f32 0.01, %v764_v54  ;;  %v765_v58 = vadd.f32 %v1334_v9, %v619_v55  ;;  %v1009_v59 = vpop.f32.mrb[12].mxu1  ;;  %v946_v60 = vpop.f32.mrb[13].mxu0 }
 0x110   :  { %v947_v61 = vadd.f32 %v946_v60, %v945_v56  ;;  %v1010_v62 = vpop.f32.mrb[13].mxu1  ;;  %v948_v63 = vpop.f32.mrb[14].mxu0 }
 0x111   :  { %v812_v0 = vsel %vm780_vm4, %v764_v54, %v796_v57  ;;  %vm781_vm5 = vcmp.gt.f32.partialorder %v765_v58, 0.0  ;;  %v797_v1 = vmul.f32 0.01, %v765_v58  ;;  %v1011_v2 = vadd.f32 %v1010_v62, %v1009_v59  ;;  %v1012_v3 = vpop.f32.mrb[14].mxu1  ;;  %v949_v4 = vpop.f32.mrb[15].mxu0 }
 0x112   :  { %828 = vst [vmem:[%s1403_s3 + $0x20] sm:$0xff] %v812_v0  ;;  %v950_v5 = vadd.f32 %v949_v4, %v948_v63  ;;  %v1013_v6 = vpop.f32.mrb[15].mxu1 }
 0x113   :  { %v813_v7 = vsel %vm781_vm5, %v765_v58, %v797_v1  ;;  %v624_v8 = vadd.f32 %v1011_v2, %v947_v61  ;;  %v1014_v10 = vadd.f32 %v1013_v6, %v1012_v3 }
 0x114   :  { %829 = vst [vmem:[%s1403_s3 + $0x28] sm:$0xff] %v813_v7 }
 0x115   :  { %v766_v11 = vadd.f32 %v1334_v9, %v624_v8  ;;  %v627_v12 = vadd.f32 %v1014_v10, %v950_v5 }
 0x116   :  { %v951_v13 = vpop.f32.mrb[16].mxu0 }
 0x117   :  { %vm782_vm6 = vcmp.gt.f32.partialorder %v766_v11, 0.0  ;;  %v798_v14 = vmul.f32 0.01, %v766_v11  ;;  %v767_v15 = vadd.f32 %v1334_v9, %v627_v12  ;;  %v1015_v16 = vpop.f32.mrb[16].mxu1  ;;  %v952_v17 = vpop.f32.mrb[17].mxu0 }
 0x118   :  { %v953_v18 = vadd.f32 %v952_v17, %v951_v13  ;;  %v1016_v19 = vpop.f32.mrb[17].mxu1  ;;  %v954_v20 = vpop.f32.mrb[18].mxu0 }
 0x119   :  { %v814_v21 = vsel %vm782_vm6, %v766_v11, %v798_v14  ;;  %vm783_vm7 = vcmp.gt.f32.partialorder %v767_v15, 0.0  ;;  %v799_v22 = vmul.f32 0.01, %v767_v15  ;;  %v1017_v23 = vadd.f32 %v1016_v19, %v1015_v16  ;;  %v1018_v24 = vpop.f32.mrb[18].mxu1  ;;  %v955_v25 = vpop.f32.mrb[19].mxu0 }
 0x11a   :  { %830 = vst [vmem:[%s1403_s3 + $0x30] sm:$0xff] %v814_v21  ;;  %v956_v26 = vadd.f32 %v955_v25, %v954_v20  ;;  %v1019_v27 = vpop.f32.mrb[19].mxu1 }
 0x11b   :  { %v815_v28 = vsel %vm783_vm7, %v767_v15, %v799_v22  ;;  %v632_v29 = vadd.f32 %v1017_v23, %v953_v18  ;;  %v1020_v30 = vadd.f32 %v1019_v27, %v1018_v24 }
 0x11c   :  { %831 = vst [vmem:[%s1403_s3 + $0x38] sm:$0xff] %v815_v28 }
 0x11d   :  { %v768_v31 = vadd.f32 %v1334_v9, %v632_v29  ;;  %v635_v32 = vadd.f32 %v1020_v30, %v956_v26 }
 0x11e   :  { %v957_v33 = vpop.f32.mrb[20].mxu0 }
 0x11f   :  { %vm784_vm8 = vcmp.gt.f32.partialorder %v768_v31, 0.0  ;;  %v800_v34 = vmul.f32 0.01, %v768_v31  ;;  %v769_v35 = vadd.f32 %v1334_v9, %v635_v32  ;;  %v1021_v36 = vpop.f32.mrb[20].mxu1  ;;  %v958_v37 = vpop.f32.mrb[21].mxu0 }
 0x120   :  { %v959_v38 = vadd.f32 %v958_v37, %v957_v33  ;;  %v1022_v39 = vpop.f32.mrb[21].mxu1  ;;  %v960_v40 = vpop.f32.mrb[22].mxu0 }
 0x121   :  { %v816_v41 = vsel %vm784_vm8, %v768_v31, %v800_v34  ;;  %vm785_vm9 = vcmp.gt.f32.partialorder %v769_v35, 0.0  ;;  %v801_v42 = vmul.f32 0.01, %v769_v35  ;;  %v1023_v43 = vadd.f32 %v1022_v39, %v1021_v36  ;;  %v1024_v44 = vpop.f32.mrb[22].mxu1  ;;  %v961_v45 = vpop.f32.mrb[23].mxu0 }
 0x122   :  { %832 = vst [vmem:[%s1403_s3 + $0x40] sm:$0xff] %v816_v41  ;;  %v962_v46 = vadd.f32 %v961_v45, %v960_v40  ;;  %v1025_v47 = vpop.f32.mrb[23].mxu1 }
 0x123   :  { %v817_v48 = vsel %vm785_vm9, %v769_v35, %v801_v42  ;;  %v640_v49 = vadd.f32 %v1023_v43, %v959_v38  ;;  %v1026_v50 = vadd.f32 %v1025_v47, %v1024_v44 }
 0x124   :  { %833 = vst [vmem:[%s1403_s3 + $0x48] sm:$0xff] %v817_v48 }
 0x125   :  { %v770_v51 = vadd.f32 %v1334_v9, %v640_v49  ;;  %v643_v52 = vadd.f32 %v1026_v50, %v962_v46 }
 0x126   :  { %v963_v53 = vpop.f32.mrb[24].mxu0 }
 0x127   :  { %vm786_vm10 = vcmp.gt.f32.partialorder %v770_v51, 0.0  ;;  %v802_v54 = vmul.f32 0.01, %v770_v51  ;;  %v771_v55 = vadd.f32 %v1334_v9, %v643_v52  ;;  %v1027_v56 = vpop.f32.mrb[24].mxu1  ;;  %v964_v57 = vpop.f32.mrb[25].mxu0 }
 0x128   :  { %v965_v58 = vadd.f32 %v964_v57, %v963_v53  ;;  %v1028_v59 = vpop.f32.mrb[25].mxu1  ;;  %v966_v60 = vpop.f32.mrb[26].mxu0 }
 0x129   :  { %v818_v61 = vsel %vm786_vm10, %v770_v51, %v802_v54  ;;  %vm787_vm11 = vcmp.gt.f32.partialorder %v771_v55, 0.0  ;;  %v803_v62 = vmul.f32 0.01, %v771_v55  ;;  %v1029_v63 = vadd.f32 %v1028_v59, %v1027_v56  ;;  %v1030_v0 = vpop.f32.mrb[26].mxu1  ;;  %v967_v1 = vpop.f32.mrb[27].mxu0 }
 0x12a   :  { %834 = vst [vmem:[%s1403_s3 + $0x50] sm:$0xff] %v818_v61  ;;  %v968_v2 = vadd.f32 %v967_v1, %v966_v60  ;;  %v1031_v3 = vpop.f32.mrb[27].mxu1 }
 0x12b   :  { %v819_v4 = vsel %vm787_vm11, %v771_v55, %v803_v62  ;;  %v648_v5 = vadd.f32 %v1029_v63, %v965_v58  ;;  %v1032_v6 = vadd.f32 %v1031_v3, %v1030_v0 }
 0x12c   :  { %835 = vst [vmem:[%s1403_s3 + $0x58] sm:$0xff] %v819_v4 }
 0x12d   :  { %v772_v7 = vadd.f32 %v1334_v9, %v648_v5  ;;  %v651_v8 = vadd.f32 %v1032_v6, %v968_v2 }
 0x12e   :  { %v969_v10 = vpop.f32.mrb[28].mxu0 }
 0x12f   :  { %vm788_vm12 = vcmp.gt.f32.partialorder %v772_v7, 0.0  ;;  %v804_v11 = vmul.f32 0.01, %v772_v7  ;;  %v773_v12 = vadd.f32 %v1334_v9, %v651_v8  ;;  %v1033_v13 = vpop.f32.mrb[28].mxu1  ;;  %v970_v14 = vpop.f32.mrb[29].mxu0 }
 0x130   :  { %v971_v15 = vadd.f32 %v970_v14, %v969_v10  ;;  %v1034_v16 = vpop.f32.mrb[29].mxu1  ;;  %v972_v17 = vpop.f32.mrb[30].mxu0 }
 0x131   :  { %v820_v18 = vsel %vm788_vm12, %v772_v7, %v804_v11  ;;  %vm789_vm13 = vcmp.gt.f32.partialorder %v773_v12, 0.0  ;;  %v805_v19 = vmul.f32 0.01, %v773_v12  ;;  %v1035_v20 = vadd.f32 %v1034_v16, %v1033_v13  ;;  %v1036_v21 = vpop.f32.mrb[30].mxu1  ;;  %v973_v22 = vpop.f32.mrb[31].mxu0 }
 0x132   :  { %836 = vst [vmem:[%s1403_s3 + $0x60] sm:$0xff] %v820_v18  ;;  %v974_v23 = vadd.f32 %v973_v22, %v972_v17  ;;  %v1037_v24 = vpop.f32.mrb[31].mxu1 }
 0x133   :  { %v821_v25 = vsel %vm789_vm13, %v773_v12, %v805_v19  ;;  %v656_v26 = vadd.f32 %v1035_v20, %v971_v15  ;;  %v1038_v27 = vadd.f32 %v1037_v24, %v1036_v21 }
 0x134   :  { %837 = vst [vmem:[%s1403_s3 + $0x68] sm:$0xff] %v821_v25 }
 0x135   :  { %v774_v28 = vadd.f32 %v1334_v9, %v656_v26  ;;  %v659_v29 = vadd.f32 %v1038_v27, %v974_v23 }
 0x137   :  { %vm790_vm14 = vcmp.gt.f32.partialorder %v774_v28, 0.0  ;;  %v806_v30 = vmul.f32 0.01, %v774_v28  ;;  %v775_v31 = vadd.f32 %v1334_v9, %v659_v29 }
 0x139   :  { %v822_v32 = vsel %vm790_vm14, %v774_v28, %v806_v30  ;;  %vm791_vm15 = vcmp.gt.f32.partialorder %v775_v31, 0.0  ;;  %v807_v33 = vmul.f32 0.01, %v775_v31 }
 0x13a   :  { %838 = vst [vmem:[%s1403_s3 + $0x70] sm:$0xff] %v822_v32 }
 0x13b   :  { %v823_v34 = vsel %vm791_vm15, %v775_v31, %v807_v33 }
 0x13c   :  { %839 = vst [vmem:[%s1403_s3 + $0x78] sm:$0xff] %v823_v34 }

</bundles_post_ra>
